<compile_context>
chip_gen: v7x
topology: tpu7x:2x2x1
jax: 0.10.0
libtpu: 0.0.40
codegen_flags: <defaults>
</compile_context>

<pallas_src>
import functools

import jax
import jax.numpy as jnp
from jax.experimental import pallas as pl
from jax.experimental.pallas import tpu as pltpu


def _loss_tail(u, i, j, *, weight_decay, batch, block_b):
    """Per-column BPR contribution -> masked block partial sum.

    u/i/j: [dim, block_b] f32, batch on the lane axis.
    """
    # x_uij = <u, i - j> per column  ->  lane-dense [1, block_b] row.
    x_uij = jnp.sum(u * (i - j), axis=0, keepdims=True)

    # Numerically stable log-sigmoid: min(x, 0) - log1p(exp(-|x|)).
    log_sig = jnp.minimum(x_uij, 0.0) - jnp.log1p(jnp.exp(-jnp.abs(x_uij)))

    # Fused regularization column-sum (|u|^2 + |i|^2 + |j|^2 per column).
    sq = jnp.sum(u * u + i * i + j * j, axis=0, keepdims=True)

    contrib = weight_decay * sq - log_sig  # [1, block_b]

    # Padded batch columns hold *real* rows (padded indices are 0), so mask the
    # whole per-column contribution: one cmp + one select on a [1, block_b] row.
    lane = jax.lax.broadcasted_iota(jnp.int32, (1, block_b), 1)
    valid = (pl.program_id(0) * block_b + lane) < batch
    return jnp.sum(jnp.where(valid, contrib, 0.0))


def _bpr_fused_kernel(wT_ref, hT_ref, u_ref, i_ref, j_ref, out_ref, *,
                      weight_decay, batch, block_b):
    """Fused gather + loss. Tables resident in VMEM; one-hot MXU gather.

    wT_ref: [dim, user_size] f32, hT_ref: [dim, item_size] f32,
    u/i/j_ref: [1, block_b] int32 index tiles.
    """
    wT = wT_ref[...]
    hT = hT_ref[...]

    def gather(tableT, idx):
        n = tableT.shape[1]
        onehot = (jax.lax.broadcasted_iota(jnp.int32, (n, block_b), 0)
                  == idx).astype(jnp.float32)          # [n, block_b]
        return jnp.dot(tableT, onehot,
                       preferred_element_type=jnp.float32)  # [dim, block_b]

    u = gather(wT, u_ref[...])
    i = gather(hT, i_ref[...])
    j = gather(hT, j_ref[...])
    partial = _loss_tail(u, i, j, weight_decay=weight_decay,
                         batch=batch, block_b=block_b)
    out_ref[...] = jnp.full(out_ref.shape, partial, dtype=out_ref.dtype)


def _bpr_slab_kernel(u_ref, i_ref, j_ref, out_ref, *,
                     weight_decay, batch, block_b):
    """Fallback path: pre-gathered [dim, block_b] f32 slabs."""
    partial = _loss_tail(u_ref[...], i_ref[...], j_ref[...],
                         weight_decay=weight_decay,
                         batch=batch, block_b=block_b)
    out_ref[...] = jnp.full(out_ref.shape, partial, dtype=out_ref.dtype)


def bpr_loss_pallas(W, H, u_idx, i_idx, j_idx, weight_decay, *,
                    block_b=8192, fuse_gather=None):
    """Forward pass of BPR: scalar loss.

    W: [user_size, dim] f32, H: [item_size, dim] f32,
    u_idx/i_idx/j_idx: [batch] int32 index vectors.
    """
    batch = int(u_idx.shape[0])
    user_size, dim = int(W.shape[0]), int(W.shape[1])
    item_size = int(H.shape[0])

    if fuse_gather is None:
        # One-hot MXU gather is only sensible / VMEM-safe for small tables.
        fuse_gather = max(user_size, item_size) <= 512

    if fuse_gather:
        # Per-step HBM traffic is just indices -> keep the tile modest so the
        # [N, block_b] one-hot intermediates stay small.
        block_b = min(block_b, 512)

    # Lane-axis tile: multiple of 128, no larger than the (rounded-up) batch.
    block_b = max(128, min(block_b, ((batch + 127) // 128) * 128))
    padded = pl.cdiv(batch, block_b) * block_b
    num_blocks = padded // block_b

    # Pad the tiny index vectors (NOT the gathered slabs).
    def pad_idx(idx):
        idx = idx.astype(jnp.int32)
        if padded != batch:
            idx = jnp.pad(idx, (0, padded - batch))
        return idx

    u_idx = pad_idx(u_idx)
    i_idx = pad_idx(i_idx)
    j_idx = pad_idx(j_idx)

    out_shape = jax.ShapeDtypeStruct((num_blocks, 128), jnp.float32)
    out_spec = pl.BlockSpec((1, 128), lambda b: (b, 0))

    # Tables once in lane-dense [dim, N] layout (tiny one-off transpose).
    wT = W.T.astype(jnp.float32)   # [dim, user_size]
    hT = H.T.astype(jnp.float32)   # [dim, item_size]

    if fuse_gather:
        kernel = functools.partial(
            _bpr_fused_kernel, weight_decay=float(weight_decay),
            batch=batch, block_b=block_b)
        table_spec_w = pl.BlockSpec((dim, user_size), lambda b: (0, 0))
        table_spec_h = pl.BlockSpec((dim, item_size), lambda b: (0, 0))
        idx_spec = pl.BlockSpec((1, block_b), lambda b: (0, b))
        cost = pl.CostEstimate(
            flops=2 * dim * (user_size + 2 * item_size) * padded
            + 10 * padded * dim,
            transcendentals=2 * padded,
            bytes_accessed=(dim * (user_size + item_size)
                            + 3 * padded + num_blocks * 128) * 4,
        )
        partials = pl.pallas_call(
            kernel,
            out_shape=out_shape,
            grid=(num_blocks,),
            in_specs=[table_spec_w, table_spec_h, idx_spec, idx_spec, idx_spec],
            out_specs=out_spec,
            compiler_params=pltpu.CompilerParams(
                dimension_semantics=("parallel",),
                vmem_limit_bytes=32 << 20,
            ),
            cost_estimate=cost,
        )(wT, hT,
          u_idx.reshape(1, padded),
          i_idx.reshape(1, padded),
          j_idx.reshape(1, padded))
    else:
        # Large-table fallback: XLA gather straight into [dim, padded] slabs.
        u_emb = jnp.take(wT, u_idx, axis=1)
        i_emb = jnp.take(hT, i_idx, axis=1)
        j_emb = jnp.take(hT, j_idx, axis=1)

        kernel = functools.partial(
            _bpr_slab_kernel, weight_decay=float(weight_decay),
            batch=batch, block_b=block_b)
        in_spec = pl.BlockSpec((dim, block_b), lambda b: (0, b))
        # 3 inputs x 2 pipeline buffers; cap at 56 MiB for v7x's 64 MiB VMEM,
        # floor at 32 MiB so v5e's 16 MiB scoped default never gates the tile.
        in_bytes = 3 * 2 * dim * block_b * 4
        vmem_limit = int(min(max(2 * in_bytes, 32 << 20), 56 << 20))
        cost = pl.CostEstimate(
            flops=10 * padded * dim,
            transcendentals=2 * padded,
            bytes_accessed=3 * padded * dim * 4 + num_blocks * 128 * 4,
        )
        partials = pl.pallas_call(
            kernel,
            out_shape=out_shape,
            grid=(num_blocks,),
            in_specs=[in_spec, in_spec, in_spec],
            out_specs=out_spec,
            compiler_params=pltpu.CompilerParams(
                dimension_semantics=("parallel",),
                vmem_limit_bytes=vmem_limit,
            ),
            cost_estimate=cost,
        )(u_emb, i_emb, j_emb)

    return jnp.sum(partials[:, 0])


def bpr_loss_ref(W, H, u_idx, i_idx, j_idx, weight_decay):
    """Pure-JAX reference matching the PyTorch module exactly."""
    u = W[u_idx, :]
    i = H[i_idx, :]
    j = H[j_idx, :]
    x_ui = jnp.sum(u * i, axis=1)
    x_uj = jnp.sum(u * j, axis=1)
    x_uij = x_ui - x_uj
    log_prob = jnp.sum(jax.nn.log_sigmoid(x_uij))
    reg = weight_decay * (
        jnp.sum(jnp.linalg.norm(u, axis=1) ** 2)
        + jnp.sum(jnp.linalg.norm(i, axis=1) ** 2)
        + jnp.sum(jnp.linalg.norm(j, axis=1) ** 2)
    )
    return -log_prob + reg


def xavier_normal(key, shape):
    fan_out, fan_in = shape  # gain * sqrt(2 / (fan_in + fan_out))
    std = (2.0 / (fan_in + fan_out)) ** 0.5
    return std * jax.random.normal(key, shape, dtype=jnp.float32)


if __name__ == "__main__":
    user_size, item_size, dim = 64, 128, 32
    batch = 8
    weight_decay = 0.025

    key = jax.random.PRNGKey(0)
    kw, kh, ku, ki, kj = jax.random.split(key, 5)

    # Deterministic xavier_normal_-style parameter init.
    W = xavier_normal(kw, (user_size, dim))
    H = xavier_normal(kh, (item_size, dim))

    u_idx = jax.random.randint(ku, (batch,), 0, user_size, dtype=jnp.int32)
    i_idx = jax.random.randint(ki, (batch,), 0, item_size, dtype=jnp.int32)
    j_idx = jax.random.randint(kj, (batch,), 0, item_size, dtype=jnp.int32)

    # Check 1: fused in-kernel gather path (small tables).
    loss = bpr_loss_pallas(W, H, u_idx, i_idx, j_idx, weight_decay)
    loss = jax.block_until_ready(loss)
    ref = bpr_loss_ref(W, H, u_idx, i_idx, j_idx, weight_decay)
    assert jnp.allclose(loss, ref, rtol=1e-5, atol=1e-5), (loss, ref)

    # Check 2: non-multiple-of-128 batch (exercises index padding + lane mask)
    # on the fused path.
    batch2 = 300
    ku2, ki2, kj2 = jax.random.split(kj, 3)
    u2 = jax.random.randint(ku2, (batch2,), 0, user_size, dtype=jnp.int32)
    i2 = jax.random.randint(ki2, (batch2,), 0, item_size, dtype=jnp.int32)
    j2 = jax.random.randint(kj2, (batch2,), 0, item_size, dtype=jnp.int32)
    loss2 = bpr_loss_pallas(W, H, u2, i2, j2, weight_decay)
    loss2 = jax.block_until_ready(loss2)
    ref2 = bpr_loss_ref(W, H, u2, i2, j2, weight_decay)
    assert jnp.allclose(loss2, ref2, rtol=1e-5, atol=1e-5), (loss2, ref2)

    # Check 3: force the large-table fallback (pre-gathered slab) path with a
    # multi-block grid to exercise per-block partial sums + masking there too.
    loss3 = bpr_loss_pallas(W, H, u2, i2, j2, weight_decay,
                            block_b=256, fuse_gather=False)
    loss3 = jax.block_until_ready(loss3)
    assert jnp.allclose(loss3, ref2, rtol=1e-5, atol=1e-5), (loss3, ref2)

    print("KERNEL_OK")
</pallas_src>

<mosaic_0001>
module attributes {stable_mosaic.version = 11 : i64} {
  func.func @_bpr_fused_kernel(%arg0: i32, %arg1: memref<32x64xf32, #tpu.memory_space<vmem>>, %arg2: memref<32x128xf32, #tpu.memory_space<vmem>>, %arg3: memref<1x128xi32, #tpu.memory_space<vmem>>, %arg4: memref<1x128xi32, #tpu.memory_space<vmem>>, %arg5: memref<1x128xi32, #tpu.memory_space<vmem>>, %arg6: memref<1x128xf32, #tpu.memory_space<vmem>>) attributes {dimension_semantics = [#tpu.dimension_semantics<parallel>], iteration_bounds = array<i64: 1>, scalar_prefetch = 0 : i64, scratch_operands = 0 : i64, tpu.core_type = #tpu.core_type<tc>, window_params = [{pipeline_mode = #tpu.pipeline_mode<synchronous>, transform_indices = @transform_0, window_bounds = array<i64: 32, 64>}, {pipeline_mode = #tpu.pipeline_mode<synchronous>, transform_indices = @transform_1, window_bounds = array<i64: 32, 128>}, {transform_indices = @transform_2, window_bounds = array<i64: 1, 128>}, {transform_indices = @transform_3, window_bounds = array<i64: 1, 128>}, {transform_indices = @transform_4, window_bounds = array<i64: 1, 128>}, {transform_indices = @transform_5, window_bounds = array<i64: 1, 128>}]} {
    %c0 = arith.constant 0 : index
    %c0_0 = arith.constant 0 : index
    %0 = vector.load %arg1[%c0, %c0_0] : memref<32x64xf32, #tpu.memory_space<vmem>>, vector<32x64xf32>
    %c0_1 = arith.constant 0 : index
    %c0_2 = arith.constant 0 : index
    %1 = vector.load %arg2[%c0_1, %c0_2] : memref<32x128xf32, #tpu.memory_space<vmem>>, vector<32x128xf32>
    %c0_3 = arith.constant 0 : index
    %c0_4 = arith.constant 0 : index
    %2 = vector.load %arg3[%c0_3, %c0_4] : memref<1x128xi32, #tpu.memory_space<vmem>>, vector<1x128xi32>
    %3 = tpu.iota {dimensions = array<i32: 0>} : vector<64x128xi32>
    %4 = vector.broadcast %2 : vector<1x128xi32> to vector<64x128xi32>
    %5 = arith.cmpi eq, %3, %4 : vector<64x128xi32>
    %6 = arith.extui %5 : vector<64x128xi1> to vector<64x128xi32>
    %7 = arith.sitofp %6 : vector<64x128xi32> to vector<64x128xf32>
    %cst = arith.constant dense<0.000000e+00> : vector<32x128xf32>
    %8 = tpu.matmul %0, %7, %cst {dimension_numbers = #tpu.dot_dimension_numbers<[1], [0], [0], [1], [0, 0, 1, 1], [], []>} : vector<32x64xf32>, vector<64x128xf32>, vector<32x128xf32> -> vector<32x128xf32>
    %c0_5 = arith.constant 0 : index
    %c0_6 = arith.constant 0 : index
    %9 = vector.load %arg4[%c0_5, %c0_6] : memref<1x128xi32, #tpu.memory_space<vmem>>, vector<1x128xi32>
    %10 = tpu.iota {dimensions = array<i32: 0>} : vector<128x128xi32>
    %11 = vector.broadcast %9 : vector<1x128xi32> to vector<128x128xi32>
    %12 = arith.cmpi eq, %10, %11 : vector<128x128xi32>
    %13 = arith.extui %12 : vector<128x128xi1> to vector<128x128xi32>
    %14 = arith.sitofp %13 : vector<128x128xi32> to vector<128x128xf32>
    %cst_7 = arith.constant dense<0.000000e+00> : vector<32x128xf32>
    %15 = tpu.matmul %1, %14, %cst_7 {dimension_numbers = #tpu.dot_dimension_numbers<[1], [0], [0], [1], [0, 0, 1, 1], [], []>} : vector<32x128xf32>, vector<128x128xf32>, vector<32x128xf32> -> vector<32x128xf32>
    %c0_8 = arith.constant 0 : index
    %c0_9 = arith.constant 0 : index
    %16 = vector.load %arg5[%c0_8, %c0_9] : memref<1x128xi32, #tpu.memory_space<vmem>>, vector<1x128xi32>
    %17 = tpu.iota {dimensions = array<i32: 0>} : vector<128x128xi32>
    %18 = vector.broadcast %16 : vector<1x128xi32> to vector<128x128xi32>
    %19 = arith.cmpi eq, %17, %18 : vector<128x128xi32>
    %20 = arith.extui %19 : vector<128x128xi1> to vector<128x128xi32>
    %21 = arith.sitofp %20 : vector<128x128xi32> to vector<128x128xf32>
    %cst_10 = arith.constant dense<0.000000e+00> : vector<32x128xf32>
    %22 = tpu.matmul %1, %21, %cst_10 {dimension_numbers = #tpu.dot_dimension_numbers<[1], [0], [0], [1], [0, 0, 1, 1], [], []>} : vector<32x128xf32>, vector<128x128xf32>, vector<32x128xf32> -> vector<32x128xf32>
    %23 = arith.subf %15, %22 : vector<32x128xf32>
    %24 = arith.mulf %8, %23 : vector<32x128xf32>
    %cst_11 = arith.constant dense<0.000000e+00> : vector<128xf32>
    %25 = vector.multi_reduction <add>, %24, %cst_11 [0] : vector<32x128xf32> to vector<128xf32>
    %26 = vector.shape_cast %25 : vector<128xf32> to vector<1x128xf32>
    %cst_12 = arith.constant 0.000000e+00 : f32
    %27 = vector.broadcast %cst_12 : f32 to vector<1x128xf32>
    %28 = arith.minimumf %26, %27 : vector<1x128xf32>
    %29 = math.absf %26 : vector<1x128xf32>
    %cst_13 = arith.constant 0.000000e+00 : f32
    %30 = vector.broadcast %cst_13 : f32 to vector<1x128xf32>
    %31 = arith.subf %30, %29 : vector<1x128xf32>
    %32 = math.exp %31 : vector<1x128xf32>
    %33 = math.log1p %32 : vector<1x128xf32>
    %34 = arith.subf %28, %33 : vector<1x128xf32>
    %35 = arith.mulf %8, %8 : vector<32x128xf32>
    %36 = arith.mulf %15, %15 : vector<32x128xf32>
    %37 = arith.addf %35, %36 : vector<32x128xf32>
    %38 = arith.mulf %22, %22 : vector<32x128xf32>
    %39 = arith.addf %37, %38 : vector<32x128xf32>
    %cst_14 = arith.constant dense<0.000000e+00> : vector<128xf32>
    %40 = vector.multi_reduction <add>, %39, %cst_14 [0] : vector<32x128xf32> to vector<128xf32>
    %41 = vector.shape_cast %40 : vector<128xf32> to vector<1x128xf32>
    %cst_15 = arith.constant 2.500000e-02 : f32
    %42 = vector.broadcast %cst_15 : f32 to vector<1x128xf32>
    %43 = arith.mulf %42, %41 : vector<1x128xf32>
    %44 = arith.subf %43, %34 : vector<1x128xf32>
    %45 = tpu.iota {dimensions = array<i32: 1>} : vector<1x128xi32>
    %c128_i32 = arith.constant 128 : i32
    %46 = arith.muli %arg0, %c128_i32 : i32
    %47 = vector.broadcast %46 : i32 to vector<1x128xi32>
    %48 = arith.addi %47, %45 : vector<1x128xi32>
    %c8_i32 = arith.constant 8 : i32
    %49 = vector.broadcast %c8_i32 : i32 to vector<1x128xi32>
    %50 = arith.cmpi slt, %48, %49 : vector<1x128xi32>
    %cst_16 = arith.constant 0.000000e+00 : f32
    %51 = vector.broadcast %cst_16 : f32 to vector<1x128xf32>
    %52 = arith.select %50, %44, %51 : vector<1x128xi1>, vector<1x128xf32>
    %53 = vector.shape_cast %52 : vector<1x128xf32> to vector<1x1x128xf32>
    %cst_17 = arith.constant dense<0.000000e+00> : vector<1xf32>
    %54 = vector.multi_reduction <add>, %53, %cst_17 [1, 2] : vector<1x1x128xf32> to vector<1xf32>
    %55 = vector.shape_cast %54 : vector<1xf32> to vector<1x1x1xf32>
    %56 = vector.extract %55[0, 0, 0] : f32 from vector<1x1x1xf32>
    %57 = vector.broadcast %56 : f32 to vector<1x128xf32>
    %c0_18 = arith.constant 0 : index
    %c0_19 = arith.constant 0 : index
    %58 = vector.load %arg6[%c0_18, %c0_19] : memref<1x128xf32, #tpu.memory_space<vmem>>, vector<1x128xf32>
    tpu.vector_store %arg6[%c0_18, %c0_19], %57 {strides = array<i32>} : memref<1x128xf32, #tpu.memory_space<vmem>>, vector<1x128xf32>,
    return
  }
  func.func @transform_0(%arg0: i32) -> (i32, i32) {
    %c0_i32 = arith.constant 0 : i32
    %c0_i32_0 = arith.constant 0 : i32
    %c0_i32_1 = arith.constant 0 : i32
    return %c0_i32, %c0_i32_0 : i32, i32
  }
  func.func @transform_1(%arg0: i32) -> (i32, i32) {
    %c0_i32 = arith.constant 0 : i32
    %c0_i32_0 = arith.constant 0 : i32
    %c0_i32_1 = arith.constant 0 : i32
    return %c0_i32, %c0_i32_0 : i32, i32
  }
  func.func @transform_2(%arg0: i32) -> (i32, i32) {
    %c0_i32 = arith.constant 0 : i32
    %c0_i32_0 = arith.constant 0 : i32
    return %c0_i32, %arg0 : i32, i32
  }
  func.func @transform_3(%arg0: i32) -> (i32, i32) {
    %c0_i32 = arith.constant 0 : i32
    %c0_i32_0 = arith.constant 0 : i32
    return %c0_i32, %arg0 : i32, i32
  }
  func.func @transform_4(%arg0: i32) -> (i32, i32) {
    %c0_i32 = arith.constant 0 : i32
    %c0_i32_0 = arith.constant 0 : i32
    return %c0_i32, %arg0 : i32, i32
  }
  func.func @transform_5(%arg0: i32) -> (i32, i32) {
    %c0_i32 = arith.constant 0 : i32
    %c0_i32_0 = arith.constant 0 : i32
    return %arg0, %c0_i32 : i32, i32
  }
}

</mosaic_0001>

<bundles_post_ra>
// kernel: tpu_custom_call.1
= control target key start
LH: loop header
LB: loop body
LE: loop exit
PB: predicated region body
PF: predicated region fallthrough
CT: control target
= control target key end

     0   :  { %10 = vsyncpa [#allocation3], 0  ;;  %s1288_s0 = inlined_call_operand.hbm [shape: f32[32,64], index: 0, kind: input, shape index: {}]   ;;  %s1289_s1 = inlined_call_operand.hbm [shape: f32[32,128], index: 1, kind: input, shape index: {}]   ;;  %s1290_s2 = inlined_call_operand.vmem [shape: s32[1,128], index: 2, kind: input, shape index: {}]   ;;  %s1291_s3 = inlined_call_operand.vmem [shape: s32[1,128], index: 3, kind: input, shape index: {}]   ;;  %s1292_s4 = inlined_call_operand.vmem [shape: s32[1,128], index: 4, kind: input, shape index: {}]   ;;  %s1293_s5 = inlined_call_operand.hbm [shape: f32[1,128], index: 5, kind: output, shape index: {}]  }
   0x1   :  { %11 = vsyncpa [#allocation6], 0 }
   0x2   :  { %12 = vsyncpa [#allocation4], 0  ;;  %s977_s18 = smov [#allocation2]   ;;  %s905_s22 = scalar_lea.hbm %s1288_s0, 512 }
   0x3   :  { %s18_s19 = sshll.u32 %s977_s18, 4  ;;  %p906_p0 = scmp.ne.s32.totalorder %s1288_s0, %s905_s22  ;;  %s19_s19 = int_to_ptr.vmem [resolvable:$true] %s18_s19 }
   0x4   :  { %p909_p1 = scmp.lt.u32.totalorder %s905_s22, %s1288_s0 }
   0x6   :  { %p911_p2 = pnand %p909_p1, %p906_p0 }
   0x8   :  { %914 = shalt.err (!%p911_p2)
}
   0x9   :  { %s915_s27 = scalar_lea.vmem %s19_s19, 512  ;;  %p920_p4 = scmp.lt.s32.totalorder %s19_s19, %s19_s19 }
   0xa   :  { %p916_p3 = scmp.ne.s32.totalorder %s19_s19, %s915_s27  ;;  %p921_p5 = scmp.lt.s32.totalorder %s915_s27, %s915_s27 }
   0xc   :  { %p922_p6 = por %p921_p5, %p920_p4 }
   0xe   :  { %p923_p7 = pnand %p922_p6, %p916_p3 }
  0x10   :  { %926 = shalt.err (!%p923_p7)
}
  0x11   :  { %s978_s28 = smov 128   ;;  %s979_s29 = smov 8  }
  0x12   :  { %24 = dma.hbm_to_vmem [thread:$0]  %s1288_s0, 512, %s19_s19, [#allocation3], %s978_s28, %s978_s28, %s979_s29  }
  0x13   :  { %s980_s7 = smov [#allocation5]   ;;  %s927_s11 = scalar_lea.hbm %s1289_s1, 512 }
  0x14   :  { %s30_s8 = sshll.u32 %s980_s7, 4  ;;  %p928_p8 = scmp.ne.s32.totalorder %s1289_s1, %s927_s11  ;;  %s31_s8 = int_to_ptr.vmem [resolvable:$true] %s30_s8 }
  0x15   :  { %p931_p9 = scmp.lt.u32.totalorder %s927_s11, %s1289_s1 }
  0x17   :  { %p933_p10 = pnand %p931_p9, %p928_p8 }
  0x19   :  { %936 = shalt.err (!%p933_p10)
}
  0x1a   :  { %s937_s16 = scalar_lea.vmem %s31_s8, 512  ;;  %p942_p12 = scmp.lt.s32.totalorder %s31_s8, %s31_s8 }
  0x1b   :  { %p938_p11 = scmp.ne.s32.totalorder %s31_s8, %s937_s16  ;;  %p943_p13 = scmp.lt.s32.totalorder %s937_s16, %s937_s16 }
  0x1d   :  { %p944_p0 = por %p943_p13, %p942_p12 }
  0x1f   :  { %p945_p1 = pnand %p944_p0, %p938_p11 }
  0x21   :  { %948 = shalt.err (!%p945_p1)
}
  0x22   :  { %36 = dma.hbm_to_vmem [thread:$0]  %s1289_s1, 512, %s31_s8, [#allocation6], %s978_s28, %s978_s28, %s979_s29  }
  0x23   :  { %971 = dma.done.wait [#allocation3], 512  }
  0x24   :  { %972 = vsyncadd [#allocation3], 4294966784 }
  0x25   :  { %973 = dma.done.wait [#allocation6], 512  }
  0x26   :  { %974 = vsyncadd [#allocation6], 4294966784  ;;  %v58_v0 = vlaneseq  ;;  %vm95_vm0 = vcmask 523264   ;;  %v576_v7 = vld [vmem:[%s1290_s2] ss:$0 sm:$0xff]  ;;  %v50_v25 = vld [vmem:[#allocation2 + $0x8] sm:$0xff] }
  0x27   :  { %v1059_v8 = vld [vmem:[%s1291_s3] ss:$0 sm:$0xff]  ;;  %v981_v11 = vmov 1.0|1.0   ;;  %v51_v28 = vld [vmem:[#allocation2 + $0x10] sm:$0xff]  ;;  %v52_v33 = vld [vmem:[#allocation2 + $0x18] sm:$0xff] }
  0x28   :  { %v1038_v1 = vshrl.u32 %v58_v0, 7  ;;  %v49_v9 = vld [vmem:[#allocation2] sm:$0xff]  ;;  %v54_v36 = vld [vmem:[#allocation5 + $0x8] sm:$0xff]  ;;  %v55_v37 = vld [vmem:[#allocation5 + $0x10] sm:$0xff] }
  0x29   :  { %731 = vmatprep.mubr.msk.f32.mxu0 %vm95_vm0, %v49_v9  ;;  %v1066_v10 = vld [vmem:[#allocation5] sm:$0xff]  ;;  %v56_v38 = vld [vmem:[#allocation5 + $0x18] sm:$0xff] }
  0x2a   :  { %v60_v2 = vadd.s32 8, %v1038_v1  ;;  %v1042_v3 = vadd.s32 16, %v1038_v1  ;;  %v1045_v4 = vadd.s32 24, %v1038_v1  ;;  %v1048_v5 = vadd.s32 32, %v1038_v1  ;;  %769 = vmatprep.mubr.f32.mxu1 %v1066_v10  ;;  %v1123_v18 = vld [vmem:[%s1292_s4] ss:$0 sm:$0xff] }
  0x2b   :  { %v1051_v6 = vadd.s32 40, %v1038_v1  ;;  %vm71_vm1 = vcmp.eq.s32.totalorder %v1038_v1, %v576_v7  ;;  %vm206_vm3 = vcmp.eq.s32.totalorder %v1038_v1, %v1059_v8  ;;  %v1079_v12 = vadd.s32 48, %v1038_v1  ;;  %s982_s4 = smov [#allocation7]  }
  0x2c   :  { %vm72_vm2 = vcmp.eq.s32.totalorder %v60_v2, %v576_v7  ;;  %vm207_vm4 = vcmp.eq.s32.totalorder %v60_v2, %v1059_v8  ;;  %vm73_vm6 = vcmp.eq.s32.totalorder %v1042_v3, %v576_v7  ;;  %vm74_vm7 = vcmp.eq.s32.totalorder %v1045_v4, %v576_v7  ;;  %s566_s21 = sshll.u32 %s982_s4, 4  ;;  %s567_s21 = int_to_ptr.vmem [resolvable:$true] %s566_s21 }
  0x2d   :  { %vm813_vm5 = vmpackc.low %vm72_vm2, %vm71_vm1  ;;  %vm208_vm8 = vcmp.eq.s32.totalorder %v1042_v3, %v1059_v8  ;;  %vm209_vm9 = vcmp.eq.s32.totalorder %v1045_v4, %v1059_v8  ;;  %vm75_vm11 = vcmp.eq.s32.totalorder %v1048_v5, %v576_v7  ;;  %vm76_vm12 = vcmp.eq.s32.totalorder %v1051_v6, %v576_v7  ;;  %s949_s23 = scalar_lea.vmem %s567_s21, 16  ;;  %s953_s24 = scalar_lea.vmem %s567_s21, 32 }
  0x2e   :  { %814 = vmatprep.subr.msk.bf16.mxu0 %vm813_vm5, %v981_v11  ;;  %vm829_vm10 = vmpackc.low %vm207_vm4, %vm206_vm3  ;;  %v1082_v13 = vadd.s32 56, %v1038_v1  ;;  %vm210_vm14 = vcmp.eq.s32.totalorder %v1048_v5, %v1059_v8  ;;  %vm211_vm15 = vcmp.eq.s32.totalorder %v1051_v6, %v1059_v8  ;;  %vm77_vm4 = vcmp.eq.s32.totalorder %v1079_v12, %v576_v7  ;;  %p950_p2 = scmp.ne.s32.totalorder %s567_s21, %s949_s23  ;;  %p954_p3 = scmp.lt.s32.totalorder %s567_s21, %s567_s21 }
  0x2f   :  { %830 = vmatprep.subr.msk.bf16.mxu1 %vm829_vm10, %v981_v11  ;;  %816 = vmatpush3.bf16.msk.msra.mxu0 %vm813_vm5, %v981_v11  ;;  %vm817_vm13 = vmpackc.low %vm74_vm7, %vm73_vm6  ;;  %vm212_vm6 = vcmp.eq.s32.totalorder %v1079_v12, %v1059_v8  ;;  %v1115_v16 = vadd.s32 64, %v1038_v1  ;;  %v1118_v17 = vadd.s32 72, %v1038_v1  ;;  %v196_v21 = vadd.s32 80, %v1038_v1  ;;  %p955_p4 = scmp.lt.s32.totalorder %s953_s24, %s949_s23 }
  0x30   :  { %832 = vmatpush3.bf16.msk.msra.mxu1 %vm829_vm10, %v981_v11  ;;  %818 = vmatprep.subr.msk.bf16.mxu0 %vm817_vm13, %v981_v11  ;;  %vm833_vm1 = vmpackc.low %vm209_vm9, %vm208_vm8  ;;  %vm78_vm5 = vcmp.eq.s32.totalorder %v1082_v13, %v576_v7  ;;  %vm213_vm7 = vcmp.eq.s32.totalorder %v1082_v13, %v1059_v8  ;;  %vm344_vm10 = vcmp.eq.s32.totalorder %v1038_v1, %v1123_v18  ;;  %v197_v22 = vadd.s32 88, %v1038_v1 }
  0x31   :  { %834 = vmatprep.subr.msk.bf16.mxu1 %vm833_vm1, %v981_v11  ;;  %vm1099_vm2 = vmpackc.low %vm76_vm12, %vm75_vm11  ;;  %vm345_vm11 = vcmp.eq.s32.totalorder %v60_v2, %v1123_v18  ;;  %vm214_vm12 = vcmp.eq.s32.totalorder %v1115_v16, %v1059_v8  ;;  %v198_v26 = vadd.s32 96, %v1038_v1  ;;  %v199_v27 = vadd.s32 104, %v1038_v1  ;;  %p956_p5 = por %p955_p4, %p954_p3 }
  0x32   :  { %vm1103_vm3 = vmpackc.low %vm211_vm15, %vm210_vm14  ;;  %v200_v31 = vadd.s32 112, %v1038_v1  ;;  %v201_v32 = vadd.s32 120, %v1038_v1 }
  0x33   :  { %820 = vmatpush3.bf16.msk.msra.mxu0 %vm817_vm13, %v981_v11  ;;  %vm1132_vm8 = vmpackc.low %vm78_vm5, %vm77_vm4  ;;  %vm215_vm13 = vcmp.eq.s32.totalorder %v1118_v17, %v1059_v8  ;;  %vm217_vm4 = vcmp.eq.s32.totalorder %v197_v22, %v1059_v8  ;;  %p957_p6 = pnand %p956_p5, %p950_p2 }
  0x34   :  { %836 = vmatpush3.bf16.msk.msra.mxu1 %vm833_vm1, %v981_v11  ;;  %822 = vmatprep.subr.msk.bf16.mxu0 %vm1099_vm2, %v981_v11  ;;  %vm1136_vm9 = vmpackc.low %vm213_vm7, %vm212_vm6  ;;  %vm346_vm1 = vcmp.eq.s32.totalorder %v1042_v3, %v1123_v18  ;;  %vm348_vm7 = vcmp.eq.s32.totalorder %v1048_v5, %v1123_v18 }
  0x35   :  { %838 = vmatprep.subr.msk.bf16.mxu1 %vm1103_vm3, %v981_v11  ;;  %vm1161_vm14 = vmpackc.low %vm345_vm11, %vm344_vm10  ;;  %vm219_vm10 = vcmp.eq.s32.totalorder %v199_v27, %v1059_v8 }
  0x36   :  { %vm1165_vm15 = vmpackc.low %vm215_vm13, %vm214_vm12  ;;  %vm350_vm13 = vcmp.eq.s32.totalorder %v1079_v12, %v1123_v18 }
  0x37   :  { %824 = vmatpush3.bf16.msk.msra.mxu0 %vm1099_vm2, %v981_v11  ;;  %vm347_vm2 = vcmp.eq.s32.totalorder %v1045_v4, %v1123_v18 }
  0x38   :  { %840 = vmatpush3.bf16.msk.msra.mxu1 %vm1103_vm3, %v981_v11  ;;  %826 = vmatprep.subr.msk.bf16.mxu0 %vm1132_vm8, %v981_v11  ;;  %vm216_vm3 = vcmp.eq.s32.totalorder %v196_v21, %v1059_v8  ;;  %vm1189_vm5 = vmpackc.low %vm347_vm2, %vm346_vm1  ;;  %vm221_vm1 = vcmp.eq.s32.totalorder %v201_v32, %v1059_v8 }
  0x39   :  { %842 = vmatprep.subr.msk.bf16.mxu1 %vm1136_vm9, %v981_v11  ;;  %vm1194_vm6 = vmpackc.low %vm217_vm4, %vm216_vm3  ;;  %vm352_vm3 = vcmp.eq.s32.totalorder %v1115_v16, %v1123_v18  ;;  %vm353_vm4 = vcmp.eq.s32.totalorder %v1118_v17, %v1123_v18 }
  0x3b   :  { %828 = vmatpush3.bf16.msk.msra.mxu0 %vm1132_vm8, %v981_v11  ;;  %vm349_vm8 = vcmp.eq.s32.totalorder %v1051_v6, %v1123_v18 }
  0x3c   :  { %844 = vmatpush3.bf16.msk.msra.mxu1 %vm1136_vm9, %v981_v11  ;;  %862 = vmatprep.subr.msk.bf16.mxu0 %vm1161_vm14, %v981_v11  ;;  %vm218_vm9 = vcmp.eq.s32.totalorder %v198_v26, %v1059_v8  ;;  %vm1219_vm11 = vmpackc.low %vm349_vm8, %vm348_vm7  ;;  %vm355_vm7 = vcmp.eq.s32.totalorder %v197_v22, %v1123_v18 }
  0x3d   :  { %846 = vmatprep.subr.msk.bf16.mxu1 %vm1165_vm15, %v981_v11  ;;  %vm1223_vm12 = vmpackc.low %vm219_vm10, %vm218_vm9  ;;  %vm356_vm9 = vcmp.eq.s32.totalorder %v198_v26, %v1123_v18  ;;  %vm357_vm10 = vcmp.eq.s32.totalorder %v199_v27, %v1123_v18 }
  0x3e   :  { %732 = vmatmul.mubr.msk.f32.vlgmr.msra.gmra.mrb[0].mxu0 %vm95_vm0, %v50_v25 }
  0x3f   :  { %864 = vmatpush3.bf16.msk.msra.mxu0 %vm1161_vm14, %v981_v11  ;;  %734 = vmatprep.mubr.msk.f32.mxu0 %vm95_vm0, %v51_v28  ;;  %vm351_vm14 = vcmp.eq.s32.totalorder %v1082_v13, %v1123_v18 }
  0x40   :  { %848 = vmatpush3.bf16.msk.msra.mxu1 %vm1165_vm15, %v981_v11  ;;  %866 = vmatprep.subr.msk.bf16.mxu0 %vm1189_vm5, %v981_v11  ;;  %vm220_vm15 = vcmp.eq.s32.totalorder %v200_v31, %v1059_v8 }
  0x41   :  { %850 = vmatprep.subr.msk.bf16.mxu1 %vm1194_vm6, %v981_v11  ;;  %vm857_vm2 = vmpackc.low %vm221_vm1, %vm220_vm15 }
  0x42   :  { %735 = vmatmul.mubr.msk.f32.gmra.mrb[2].mxu0 %vm95_vm0, %v52_v33  ;;  %vm873_vm0 = vmpackc.low %vm351_vm14, %vm350_vm13  ;;  %vm359_vm13 = vcmp.eq.s32.totalorder %v201_v32, %v1123_v18 }
  0x43   :  { %868 = vmatpush3.bf16.msk.msra.mxu0 %vm1189_vm5, %v981_v11  ;;  %807 = vmatprep.mubr.f32.mxu0 %v1066_v10  ;;  %vm877_vm5 = vmpackc.low %vm353_vm4, %vm352_vm3 }
  0x44   :  { %852 = vmatpush3.bf16.msk.msra.mxu1 %vm1194_vm6, %v981_v11  ;;  %870 = vmatprep.subr.msk.bf16.mxu0 %vm1219_vm11, %v981_v11  ;;  %vm354_vm6 = vcmp.eq.s32.totalorder %v196_v21, %v1123_v18 }
  0x45   :  { %854 = vmatprep.subr.msk.bf16.mxu1 %vm1223_vm12, %v981_v11  ;;  %vm881_vm8 = vmpackc.low %vm355_vm7, %vm354_vm6 }
  0x47   :  { %872 = vmatpush3.bf16.msk.msra.mxu0 %vm1219_vm11, %v981_v11  ;;  %vm885_vm11 = vmpackc.low %vm357_vm10, %vm356_vm9 }
  0x48   :  { %856 = vmatpush3.bf16.msk.msra.mxu1 %vm1223_vm12, %v981_v11  ;;  %874 = vmatprep.subr.msk.bf16.mxu0 %vm873_vm0, %v981_v11  ;;  %vm358_vm12 = vcmp.eq.s32.totalorder %v200_v31, %v1123_v18 }
  0x49   :  { %858 = vmatprep.subr.msk.bf16.mxu1 %vm857_vm2, %v981_v11  ;;  %vm889_vm14 = vmpackc.low %vm359_vm13, %vm358_vm12 }
  0x4b   :  { %876 = vmatpush3.bf16.msk.msra.mxu0 %vm873_vm0, %v981_v11  ;;  %vm547_vm0 = vcmask 1040384  }
  0x4c   :  { %860 = vmatpush3.bf16.msk.msra.mxu1 %vm857_vm2, %v981_v11  ;;  %878 = vmatprep.subr.msk.bf16.mxu0 %vm877_vm5, %v981_v11 }
  0x4f   :  { %770 = vmatmul.mubr.f32.vlgmr.msra.gmra.mrb[0].mxu1 %v54_v36  ;;  %880 = vmatpush3.bf16.msk.msra.mxu0 %vm877_vm5, %v981_v11 }
  0x50   :  { %882 = vmatprep.subr.msk.bf16.mxu0 %vm881_vm8, %v981_v11  ;;  %772 = vmatprep.mubr.f32.mxu1 %v55_v37 }
  0x53   :  { %884 = vmatpush3.bf16.msk.msra.mxu0 %vm881_vm8, %v981_v11  ;;  %773 = vmatmul.mubr.f32.gmra.mrb[2].mxu1 %v56_v38 }
  0x54   :  { %886 = vmatprep.subr.msk.bf16.mxu0 %vm885_vm11, %v981_v11 }
  0x57   :  { %888 = vmatpush3.bf16.msk.msra.mxu0 %vm885_vm11, %v981_v11 }
  0x58   :  { %890 = vmatprep.subr.msk.bf16.mxu0 %vm889_vm14, %v981_v11 }
  0x5b   :  { %892 = vmatpush3.bf16.msk.msra.mxu0 %vm889_vm14, %v981_v11 }
  0x5e   :  { %808 = vmatmul.mubr.f32.vlgmr.msra.gmra.mrb[4].mxu0 %v54_v36 }
  0x5f   :  { %810 = vmatprep.mubr.f32.mxu0 %v55_v37 }
  0x62   :  { %811 = vmatmul.mubr.f32.gmra.mrb[6].mxu0 %v56_v38 }
 0x111   :  { %v733_v39 = vpop.f32.mrb[0].mxu0 }
 0x112   :  { %v174_v40 = vpop.f32.mrb[1].mxu0  ;;  %v510_v44 = vmul.f32 %v733_v39, %v733_v39 }
 0x113   :  { %v509_v47 = vmul.f32 %v174_v40, %v174_v40 }
 0x115   :  { %v736_v41 = vpop.f32.mrb[2].mxu0 }
 0x116   :  { %v184_v42 = vpop.f32.mrb[3].mxu0  ;;  %v512_v50 = vmul.f32 %v736_v41, %v736_v41 }
 0x117   :  { %v511_v53 = vmul.f32 %v184_v42, %v184_v42 }
 0x122   :  { %v771_v43 = vpop.f32.mrb[0].mxu1 }
 0x123   :  { %v514_v45 = vmul.f32 %v771_v43, %v771_v43  ;;  %v320_v46 = vpop.f32.mrb[1].mxu1 }
 0x124   :  { %v513_v48 = vmul.f32 %v320_v46, %v320_v46 }
 0x125   :  { %v518_v49 = vadd.f32 %v514_v45, %v510_v44  ;;  %v541_v45 = vand.u32 127, %v58_v0 }
 0x126   :  { %v517_v51 = vadd.f32 %v513_v48, %v509_v47  ;;  %v774_v52 = vpop.f32.mrb[2].mxu1 }
 0x127   :  { %v516_v54 = vmul.f32 %v774_v52, %v774_v52  ;;  %v330_v55 = vpop.f32.mrb[3].mxu1  ;;  %vm545_vm1 = vcmp.lt.s32.totalorder %v541_v45, 8 }
 0x128   :  { %v515_v56 = vmul.f32 %v330_v55, %v330_v55 }
 0x129   :  { %v520_v57 = vadd.f32 %v516_v54, %v512_v50 }
 0x12a   :  { %v519_v58 = vadd.f32 %v515_v56, %v511_v53 }
 0x131   :  { %v809_v59 = vpop.f32.mrb[4].mxu0 }
 0x132   :  { %v478_v60 = vsub.f32 %v771_v43, %v809_v59  ;;  %v522_v61 = vmul.f32 %v809_v59, %v809_v59  ;;  %v458_v62 = vpop.f32.mrb[5].mxu0 }
 0x133   :  { %v477_v63 = vsub.f32 %v320_v46, %v458_v62  ;;  %v521_v1 = vmul.f32 %v458_v62, %v458_v62 }
 0x134   :  { %v482_v2 = vmul.f32 %v733_v39, %v478_v60  ;;  %v526_v3 = vadd.f32 %v522_v61, %v518_v49 }
 0x135   :  { %v481_v4 = vmul.f32 %v477_v63, %v174_v40  ;;  %v525_v5 = vadd.f32 %v521_v1, %v517_v51  ;;  %v812_v6 = vpop.f32.mrb[6].mxu0 }
 0x136   :  { %v480_v7 = vsub.f32 %v774_v52, %v812_v6  ;;  %v524_v8 = vmul.f32 %v812_v6, %v812_v6  ;;  %v468_v9 = vpop.f32.mrb[7].mxu0 }
 0x137   :  { %v485_v10 = vadd.f32 %v482_v2, %v481_v4  ;;  %v529_v11 = vadd.f32 %v526_v3, %v525_v5  ;;  %v479_v12 = vsub.f32 %v330_v55, %v468_v9  ;;  %v523_v13 = vmul.f32 %v468_v9, %v468_v9 }
 0x138   :  { %v484_v14 = vmul.f32 %v736_v41, %v480_v7  ;;  %v528_v15 = vadd.f32 %v524_v8, %v520_v57 }
 0x139   :  { %v483_v16 = vmul.f32 %v479_v12, %v184_v42  ;;  %v527_v17 = vadd.f32 %v523_v13, %v519_v58 }
 0x13b   :  { %v486_v18 = vadd.f32 %v485_v10, %v483_v16  ;;  %v530_v19 = vadd.f32 %v529_v11, %v527_v17 }
 0x13d   :  { %v487_v20 = vadd.f32 %v486_v18, %v484_v14  ;;  %v531_v21 = vadd.f32 %v530_v19, %v528_v15 }
 0x13f   :  { %v488_v22 = vrot.slane %v487_v20, 4  ;;  %v532_v31 = vrot.slane %v531_v21, 4 }
 0x141   :  { %v489_v23 = vadd.f32 %v488_v22, %v487_v20  ;;  %v533_v32 = vadd.f32 %v532_v31, %v531_v21 }
 0x143   :  { %v490_v24 = vrot.slane %v489_v23, 2  ;;  %v534_v35 = vrot.slane %v533_v32, 2 }
 0x145   :  { %v491_v25 = vadd.f32 %v490_v24, %v489_v23  ;;  %v535_v36 = vadd.f32 %v534_v35, %v533_v32 }
 0x147   :  { %v492_v26 = vrot.slane %v491_v25, 1  ;;  %v536_v38 = vrot.slane %v535_v36, 1 }
 0x149   :  { %v493_v27 = vadd.f32 %v492_v26, %v491_v25  ;;  %v537_v42 = vadd.f32 %v536_v38, %v535_v36 }
 0x14b   :  { %v495_v28 = vand.u32 2147483647, %v493_v27  ;;  %v494_v46 = vmin.f32 %v493_v27, 0.0  ;;  %v538_v49 = vmul.f32 0.025, %v537_v42 }
 0x14d   :  { %v496_v29 = vsub.f32 0.0, %v495_v28 }
 0x14f   :  { %v497_v30 = vmul.f32 1.442695, %v496_v29 }
 0x151   :  { %901 = vpow2.f32 %v497_v30 }
 0x15b   :  { %v902_v33 = vpop.eup %901 }
 0x15c   :  { %v499_v34 = vadd.f32 1.0, %v902_v33  ;;  %v502_v37 = vmul.f32 -0.5, %v902_v33  ;;  %v505_v40 = vand.u32 2147483647, %v902_v33 }
 0x15e   :  { %903 = vlog2.f32 %v499_v34  ;;  %v503_v39 = vadd.f32 1.0, %v502_v37  ;;  %vm506_vm15 = vcmp.lt.f32.partialorder %v505_v40, 0.0004427343 }
 0x160   :  { %v504_v44 = vmul.f32 %v902_v33, %v503_v39 }
 0x168   :  { %v904_v41 = vpop.eup %903 }
 0x169   :  { %v501_v43 = vmul.f32 0.6931472, %v904_v41 }
 0x16b   :  { %v507_v47 = vsel %vm506_vm15, %v504_v44, %v501_v43 }
 0x16c   :  { %v508_v48 = vsub.f32 %v494_v46, %v507_v47 }
 0x16e   :  { %v539_v50 = vsub.f32 %v538_v49, %v508_v48 }
 0x170   :  { %v546_v51 = vsel %vm545_vm1, %v539_v50, 0.0 }
 0x171   :  { %v548_v52 = vsel %vm547_vm0, %v546_v51, 0.0 }
 0x172   :  { %549 = vadd.xlane.f32.xlu0 %v548_v52 }
 0x1ff   :  { %v550_v53 = vpop.xlane.xlu0 %549 }
 0x200   :  { %v551_v54 = vrot.slane %v550_v53, 4 }
 0x202   :  { %v552_v55 = vadd.f32 %v551_v54, %v550_v53 }
 0x204   :  { %v553_v56 = vrot.slane %v552_v55, 2 }
 0x206   :  { %v554_v57 = vadd.f32 %v553_v56, %v552_v55 }
 0x208   :  { %v555_v58 = vrot.slane %v554_v57, 1 }
 0x20a   :  { %v556_v59 = vadd.f32 %v555_v58, %v554_v57 }
 0x20c   :  { %893 = vpush %v556_v59 }
 0x23d   :  { %s894_s22 = spop %893 }
 0x23e   :  { %v558_v0 = vstv %s894_s22 }
 0x23f   :  { %559 = vst [vmem:[#allocation7] sm:$0x1] %v558_v0 }
 0x240   :  { %960 = shalt.err (!%p957_p6)
}
 0x241   :  { %s961_s27 = scalar_lea.hbm %s1293_s5, 16 }
 0x242   :  { %p962_p7 = scmp.ne.s32.totalorder %s1293_s5, %s961_s27  ;;  %p965_p8 = scmp.lt.u32.totalorder %s961_s27, %s1293_s5 }
 0x244   :  { %p967_p9 = pnand %p965_p8, %p962_p7 }
 0x246   :  { %970 = shalt.err (!%p967_p9)
}
 0x247   :  { %569 = dma.vmem_to_hbm [thread:$0]  %s567_s21, 16, %s1293_s5, [#allocation4]  }
 0x248   :  { %975 = dma.done.wait [#allocation4], 16  }
 0x249   :  { %976 = vsyncadd [#allocation4], 4294967280 }
 0x24a   :  { %573 = vsyncpa [#allocation3], 1 }
 0x24b   :  { %574 = vsyncpa [#allocation6], 1 }
 0x24c   :  { %575 = vsyncpa [#allocation4], 1 }

</bundles_post_ra>
